<compile_context>
chip_gen: v6e
topology: v6e:2x2x1
jax: 0.10.0
libtpu: 0.0.40
codegen_flags: <defaults>
</compile_context>

<pallas_src>
import jax
import jax.numpy as jnp
from jax.experimental import pallas as pl
from jax.experimental.pallas import tpu as pltpu


def _focal_ce_tile_kernel(preds_ref, labels_ref, out_ref):
    """Per-(image, pixel-tile) cross-entropy partial sums.

    preds_ref : (1, C, rows, 128)  logits (any float dtype; upcast to f32)
    labels_ref: (1, 1, rows, 128)  int labels (-1 == padding / masked)
    out_ref   : (1, 1, 128)        lane-partial CE sums for this tile
    """
    x = preds_ref[0].astype(jnp.float32)            # (C, rows, 128)
    lbl = labels_ref[0].astype(jnp.int32)           # (1, rows, 128)

    # Selector of the true class along the leading (untiled) class axis.
    class_iota = jax.lax.broadcasted_iota(jnp.int32, x.shape, 0)
    sel = class_iota == lbl                         # (C, rows, 128) bool

    # Numerically-stable logsumexp over the class axis: elementwise VPU work
    # across C vreg slabs; exp on the EUP (separate issue slot).
    m = jnp.max(x, axis=0)                                       # (rows, 128)
    lse = m + jnp.log(jnp.sum(jnp.exp(x - m[None]), axis=0))     # (rows, 128)
    true_logit = jnp.sum(jnp.where(sel, x, 0.0), axis=0)         # (rows, 128)

    # Padded / tail pixels carry label -1 -> contribute exactly 0 to the sum.
    ce = jnp.where(lbl[0] >= 0, lse - true_logit, 0.0)           # (rows, 128)

    # One sublane reduction per tile; lanes are reduced in the JAX epilogue.
    out_ref[...] = jnp.sum(ce, axis=0, keepdims=True).reshape(1, 1, 128)


def _vmem_capacity_bytes():
    """Physical VMEM of the current TPU generation (conservative fallback)."""
    try:
        cap = getattr(pltpu.get_tpu_info(), "vmem_capacity_bytes", None)
        if cap:
            return int(cap)
    except Exception:
        pass
    return 64 * 1024 * 1024          # v7x-sized fallback: safe on every gen


def _plan_tiling(n_rows, n_classes, preds_itemsize, vmem_cap):
    """Pick (rows_per_tile, num_tiles, padded_rows, label_dtype).

    The VMEM budget per grid step covers: 2x double-buffered logits block,
    2x double-buffered labels block, and the in-kernel f32 working copy."""
    label_dtype = jnp.int8 if n_classes <= 127 else jnp.int32
    label_itemsize = jnp.dtype(label_dtype).itemsize

    per_row = (2 * n_classes * 128 * preds_itemsize     # logits, double-buffered
               + 2 * 128 * label_itemsize               # labels, double-buffered
               + n_classes * 128 * 4)                   # f32 upcast copy
    budget = int(vmem_cap * 0.45)
    cap = max(8, budget // per_row)

    if n_rows <= cap:
        # Whole image's pixel axis in one block (full-dim block: always legal).
        return n_rows, 1, n_rows, label_dtype

    align = 32 if label_itemsize == 1 else 8            # int8 sublane packing
    if cap < align:
        label_dtype, label_itemsize, align = jnp.int32, 4, 8
    cap_al = max(align, (cap // align) * align)

    # Prefer an exact divisor of n_rows -> no tail tile, no label row padding.
    d = cap_al
    while d >= align:
        if n_rows % d == 0:
            return d, n_rows // d, n_rows, label_dtype
        d -= align

    # Fallback: non-dividing tile.  Only the labels are padded (cheap); the
    # tail rows of the last tile are masked in-kernel via label == -1, the
    # logits tensor is NOT padded (Pallas clamps the boundary DMA).
    num_tiles = pl.cdiv(n_rows, cap_al)
    return cap_al, num_tiles, num_tiles * cap_al, label_dtype


def focal_loss(preds_nchw, labels_nhw, *, alpha=0.5, gamma=2.0):
    """preds_nchw: (N, C, H, W) float; labels_nhw: (N, H, W) int -> scalar f32."""
    N, C, H, W = preds_nchw.shape
    HW = H * W
    P = N * HW                                   # mean-CE denominator

    n_rows = pl.cdiv(HW, 128)
    lane_pad = n_rows * 128 - HW

    vmem_cap = _vmem_capacity_bytes()
    rows_per_tile, num_tiles, n_rows_p, label_dtype = _plan_tiling(
        n_rows, C, preds_nchw.dtype.itemsize, vmem_cap)

    # Logits stay in NCHW: free metadata reshapes only (plus a small lane pad
    # iff HW is not a multiple of 128 -- unavoidable for the (rows,128) view).
    preds_f = preds_nchw.reshape(N, C, HW)
    if lane_pad:
        preds_f = jnp.pad(preds_f, ((0, 0), (0, 0), (0, lane_pad)))
    preds_t = preds_f.reshape(N, C, n_rows, 128)

    # Labels are C-times smaller: narrow dtype + pad rows up to the tile grid
    # with -1 (covers both the HW tail and any non-dividing tile tail).
    labels_f = labels_nhw.reshape(N, HW).astype(label_dtype)
    label_pad = n_rows_p * 128 - HW
    if label_pad:
        labels_f = jnp.pad(labels_f, ((0, 0), (0, label_pad)),
                           constant_values=-1)
    labels_t = labels_f.reshape(N, 1, n_rows_p, 128)

    # Scoped-VMEM limit: double-buffered inputs + f32 copy + headroom,
    # capped below the generation's physical VMEM.
    preds_blk = C * rows_per_tile * 128 * preds_nchw.dtype.itemsize
    labels_blk = rows_per_tile * 128 * jnp.dtype(label_dtype).itemsize
    need = 2 * (preds_blk + labels_blk) + C * rows_per_tile * 128 * 4
    vmem_limit = min(int(vmem_cap * 0.9), max(need + (4 << 20), 32 << 20))

    partials = pl.pallas_call(
        _focal_ce_tile_kernel,
        out_shape=jax.ShapeDtypeStruct((N * num_tiles, 1, 128), jnp.float32),
        grid_spec=pltpu.PrefetchScalarGridSpec(
            num_scalar_prefetch=0,
            grid=(N, num_tiles),
            in_specs=[
                pl.BlockSpec((1, C, rows_per_tile, 128),
                             lambda n, t: (n, 0, t, 0)),
                pl.BlockSpec((1, 1, rows_per_tile, 128),
                             lambda n, t: (n, 0, t, 0)),
            ],
            out_specs=pl.BlockSpec((1, 1, 128),
                                   lambda n, t: (n * num_tiles + t, 0, 0)),
        ),
        compiler_params=pltpu.CompilerParams(
            dimension_semantics=("parallel", "parallel"),
            vmem_limit_bytes=vmem_limit),
    )(preds_t, labels_t)

    # Tiny scalar epilogue in plain JAX (matches PyTorch: focal transform of
    # the MEAN cross-entropy, as in the reference module).
    mean_ce = jnp.sum(partials) / jnp.float32(P)
    logpt = -mean_ce
    pt = jnp.exp(logpt)
    return -((1.0 - pt) ** gamma) * alpha * logpt


def focal_loss_ref(preds_nchw, labels_nhw, *, alpha=0.5, gamma=2.0):
    """Pure-JAX reference matching PyTorch FocalLoss.forward."""
    N, C, H, W = preds_nchw.shape
    x = jnp.transpose(preds_nchw, (0, 2, 3, 1)).reshape(-1, C).astype(jnp.float32)
    y = labels_nhw.reshape(-1)
    logp = jax.nn.log_softmax(x, axis=-1)
    ce = -jnp.take_along_axis(logp, y[:, None], axis=-1)[:, 0]
    mean_ce = jnp.mean(ce)
    logpt = -mean_ce
    pt = jnp.exp(logpt)
    return -((1.0 - pt) ** gamma) * alpha * logpt


if __name__ == "__main__":
    key = jax.random.PRNGKey(0)
    k1, k2 = jax.random.split(key)
    N, C, H, W = 2, 4, 16, 16
    preds = jax.random.normal(k1, (N, C, H, W), dtype=jnp.float32)
    labels = jax.random.randint(k2, (N, H, W), 0, C, dtype=jnp.int32)

    loss = focal_loss(preds, labels, alpha=0.5, gamma=2.0)
    loss = jax.block_until_ready(loss)

    ref = focal_loss_ref(preds, labels, alpha=0.5, gamma=2.0)
    assert jnp.allclose(loss, ref, rtol=1e-5, atol=1e-5), (loss, ref)
    print("KERNEL_OK")
</pallas_src>

<mosaic_0001>
module attributes {stable_mosaic.version = 11 : i64} {
  func.func @_focal_ce_tile_kernel(%arg0: i32, %arg1: i32, %arg2: memref<1x4x2x128xf32, #tpu.memory_space<vmem>>, %arg3: memref<1x1x2x128xi8, #tpu.memory_space<vmem>>, %arg4: memref<1x1x128xf32, #tpu.memory_space<vmem>>) attributes {dimension_semantics = [#tpu.dimension_semantics<parallel>, #tpu.dimension_semantics<parallel>], iteration_bounds = array<i64: 2, 1>, scalar_prefetch = 0 : i64, scratch_operands = 0 : i64, tpu.core_type = #tpu.core_type<tc>, window_params = [{transform_indices = @transform_0, window_bounds = array<i64: 1, 4, 2, 128>}, {transform_indices = @transform_1, window_bounds = array<i64: 1, 1, 2, 128>}, {transform_indices = @transform_2, window_bounds = array<i64: 1, 1, 128>}]} {
    %c0 = arith.constant 0 : index
    %c0_0 = arith.constant 0 : index
    %c0_1 = arith.constant 0 : index
    %c0_2 = arith.constant 0 : index
    %0 = vector.load %arg2[%c0, %c0_0, %c0_1, %c0_2] : memref<1x4x2x128xf32, #tpu.memory_space<vmem>>, vector<1x4x2x128xf32>
    %1 = vector.shape_cast %0 : vector<1x4x2x128xf32> to vector<4x2x128xf32>
    %c0_3 = arith.constant 0 : index
    %c0_4 = arith.constant 0 : index
    %c0_5 = arith.constant 0 : index
    %c0_6 = arith.constant 0 : index
    %2 = vector.load %arg3[%c0_3, %c0_4, %c0_5, %c0_6] : memref<1x1x2x128xi8, #tpu.memory_space<vmem>>, vector<1x1x2x128xi8>
    %3 = vector.shape_cast %2 : vector<1x1x2x128xi8> to vector<1x2x128xi8>
    %4 = arith.extsi %3 : vector<1x2x128xi8> to vector<1x2x128xi32>
    %5 = tpu.iota {dimensions = array<i32: 0>} : vector<4x2x128xi32>
    %6 = vector.broadcast %4 : vector<1x2x128xi32> to vector<4x2x128xi32>
    %7 = arith.cmpi eq, %5, %6 : vector<4x2x128xi32>
    %cst = arith.constant dense<0xFF800000> : vector<2x128xf32>
    %8 = vector.multi_reduction <maximumf>, %1, %cst [0] : vector<4x2x128xf32> to vector<2x128xf32>
    %9 = vector.shape_cast %8 : vector<2x128xf32> to vector<1x2x128xf32>
    %10 = vector.broadcast %9 : vector<1x2x128xf32> to vector<4x2x128xf32>
    %11 = arith.subf %1, %10 : vector<4x2x128xf32>
    %12 = math.exp %11 : vector<4x2x128xf32>
    %cst_7 = arith.constant dense<0.000000e+00> : vector<2x128xf32>
    %13 = vector.multi_reduction <add>, %12, %cst_7 [0] : vector<4x2x128xf32> to vector<2x128xf32>
    %14 = math.log %13 : vector<2x128xf32>
    %15 = arith.addf %8, %14 : vector<2x128xf32>
    %cst_8 = arith.constant 0.000000e+00 : f32
    %16 = vector.broadcast %cst_8 : f32 to vector<4x2x128xf32>
    %17 = arith.select %7, %1, %16 : vector<4x2x128xi1>, vector<4x2x128xf32>
    %cst_9 = arith.constant dense<0.000000e+00> : vector<2x128xf32>
    %18 = vector.multi_reduction <add>, %17, %cst_9 [0] : vector<4x2x128xf32> to vector<2x128xf32>
    %19 = vector.shape_cast %4 : vector<1x2x128xi32> to vector<2x128xi32>
    %c0_i32 = arith.constant 0 : i32
    %20 = vector.broadcast %c0_i32 : i32 to vector<2x128xi32>
    %21 = arith.cmpi sge, %19, %20 : vector<2x128xi32>
    %22 = arith.subf %15, %18 : vector<2x128xf32>
    %cst_10 = arith.constant 0.000000e+00 : f32
    %23 = vector.broadcast %cst_10 : f32 to vector<2x128xf32>
    %24 = arith.select %21, %22, %23 : vector<2x128xi1>, vector<2x128xf32>
    %cst_11 = arith.constant dense<0.000000e+00> : vector<128xf32>
    %25 = vector.multi_reduction <add>, %24, %cst_11 [0] : vector<2x128xf32> to vector<128xf32>
    %26 = vector.shape_cast %25 : vector<128xf32> to vector<1x128xf32>
    %27 = vector.shape_cast %26 : vector<1x128xf32> to vector<1x1x128xf32>
    %c0_12 = arith.constant 0 : index
    %c0_13 = arith.constant 0 : index
    %c0_14 = arith.constant 0 : index
    %28 = vector.load %arg4[%c0_12, %c0_13, %c0_14] : memref<1x1x128xf32, #tpu.memory_space<vmem>>, vector<1x1x128xf32>
    tpu.vector_store %arg4[%c0_12, %c0_13, %c0_14], %27 {strides = array<i32>} : memref<1x1x128xf32, #tpu.memory_space<vmem>>, vector<1x1x128xf32>,
    return
  }
  func.func @transform_0(%arg0: i32, %arg1: i32) -> (i32, i32, i32, i32) {
    %c0_i32 = arith.constant 0 : i32
    %c0_i32_0 = arith.constant 0 : i32
    %c0_i32_1 = arith.constant 0 : i32
    return %arg0, %c0_i32, %arg1, %c0_i32_0 : i32, i32, i32, i32
  }
  func.func @transform_1(%arg0: i32, %arg1: i32) -> (i32, i32, i32, i32) {
    %c0_i32 = arith.constant 0 : i32
    %c0_i32_0 = arith.constant 0 : i32
    %c0_i32_1 = arith.constant 0 : i32
    return %arg0, %c0_i32, %arg1, %c0_i32_0 : i32, i32, i32, i32
  }
  func.func @transform_2(%arg0: i32, %arg1: i32) -> (i32, i32, i32) {
    %c1_i32 = arith.constant 1 : i32
    %0 = arith.muli %arg0, %c1_i32 : i32
    %1 = arith.addi %0, %arg1 : i32
    %c0_i32 = arith.constant 0 : i32
    %c0_i32_0 = arith.constant 0 : i32
    %c0_i32_1 = arith.constant 0 : i32
    return %1, %c0_i32, %c0_i32_0 : i32, i32, i32
  }
}

</mosaic_0001>

<bundles_post_ra>
// kernel: tpu_custom_call.1
= control target key start
LH: loop header
LB: loop body
LE: loop exit
PB: predicated region body
PF: predicated region fallthrough
CT: control target
= control target key end

     0   :  { %7 = vsyncpa [#allocation3], 0  ;;  %s821_s0 = inlined_call_operand.hbm [shape: f32[2,4,2,128], index: 0, kind: input, shape index: {}]   ;;  %s822_s1 = inlined_call_operand.hbm [shape: s8[2,1,2,128], index: 1, kind: input, shape index: {}]   ;;  %s823_s2 = inlined_call_operand.hbm [shape: f32[2,1,128], index: 2, kind: output, shape index: {}]  }
   0x1   :  { %9 = vsyncpa [#allocation3 + $0x1], 0 }
   0x2   :  { %10 = vsyncpa [#allocation6], 0 }
   0x3   :  { %12 = vsyncpa [#allocation6 + $0x1], 0 }
   0x4   :  { %13 = vsyncpa [#allocation4], 0 }
   0x5   :  { %15 = vsyncpa [#allocation4 + $0x1], 0  ;;  %s645_s9 = smov 0   ;;  %s647_s10 = smov 0  }
   0x6   :  { %s649_s11 = smov 0   ;;  %s651_s12 = smov 0  }
   0x7   :  { %s653_s13 = smov 0   ;;  %s655_s14 = smov 0  }
   0x8 LB: > { %s390_s15 = sadd.s32 4294967295, %s623_s14   ;;  %s391_s16 = sadd.s32 4294967294, %s623_s14   ;;  %s623_s14 = sphi %s655_s14, %s21_s14   ;;  %s619_s13 = sphi %s653_s13, %s835_s13   ;;  %s615_s12 = sphi %s651_s12, %s834_s12   ;;  %s611_s11 = sphi %s649_s11, %s833_s11   ;;  %s607_s10 = sphi %s647_s10, %s832_s10   ;;  %s603_s9 = sphi %s645_s9, %s831_s9  }
   0x9   : > { %s33_s17 = sadd.s32 1, %s619_s13  ;;  %s42_s18 = sadd.s32 1, %s611_s11 }
   0xa   : > { %p35_p0 = scmp.ge.s32.totalorder %s33_s17, 2  ;;  %p49_p1 = scmp.ne.s32.totalorder %s611_s11, %s607_s10 }
   0xb   : > { %p50_p2 = scmp.eq.s32.totalorder %s623_s14, 0  ;;  %p55_p3 = scmp.ne.s32.totalorder %s607_s10, %s603_s9 }
   0xc   : > { %s837_s17 = smov (%p35_p0, %s33_s17), 0  ;;  %p56_p5 = scmp.eq.s32.totalorder %s390_s15, 0 }
   0xd   : > { %p686_p4 = por %p50_p2, %p49_p1  ;;  %s37_s20 = ssub.s32 %s619_s13, %s837_s17 }
   0xe   : > { %p109_p6 = scmp.eq.s32.totalorder %s390_s15, 1  ;;  %p40_p7 = scmp.eq.s32.totalorder %s37_s20, 0 }
   0xf   : > { %p692_p8 = por %p56_p5, %p55_p3  ;;  %p115_p10 = scmp.eq.s32.totalorder %s391_s16, 1 }
  0x10   : > { %p696_p9 = por %p109_p6, %p49_p1  ;;  %p421_p13 = scmp.lt.s32.totalorder %s623_s14, 2 }
  0x11   : > { %s701_s23 = scalar_select %p40_p7, %s611_s11, %s42_s18  }
  0x12   : > { %p703_p11 = por %p115_p10, %p55_p3  ;;  %s710_s25 = sand.u32 1, %s611_s11  }
  0x13   : > { %s394_s26 = sshll.u32 %s710_s25, 3  ;;  %s403_s27 = sshll.u32 %s619_s13, 7 }
  0x14   : > { %s146_s30 = scalar_lea.hbm %s821_s0, %s403_s27  ;;  %s139_s3 = scalar_lea.vmem [#allocation2], %s394_s26 }
  0x15   : > { %s147_s4 = sshll.u32 %s139_s3, 4  ;;  %p719_p0 = pnand %p421_p13, %p686_p4  ;;  %s148_s4 = int_to_ptr.vmem [resolvable:$true] %s147_s4 }
  0x16   : > { %p398_p1 = scmp.ge.s32.totalorder %s623_s14, 1  ;;  %s136_s6 = scalar_lea.sflag [#allocation3], %s710_s25 }
  0x17   : > { %p485_p2 = pneg %p719_p0  ;;  %s496_s7 = scalar_lea.vmem %s148_s4, 128 }
  0x18   : > { %p497_p3 = scmp.ne.s32.totalorder %s148_s4, %s496_s7  ;;  %s625_s8 = smov [#allocation2]  }
  0x19   : > { %s501_s15 = sshll.u32 %s625_s8, 4  ;;  %s502_s15 = int_to_ptr.vmem [resolvable:$false] %s501_s15 }
  0x1a   : > { %p499_p5 = pnand %p497_p3, %p485_p2  ;;  %s503_s16 = scalar_lea.vmem %s502_s15, 256 }
  0x1b   : > { %p504_p4 = scmp.lt.s32.totalorder %s148_s4, %s502_s15  ;;  %p505_p7 = scmp.lt.s32.totalorder %s503_s16, %s496_s7 }
  0x1c   : > { %p500_p6 = pneg %p499_p5 }
  0x1d   : > { %p506_p10 = por %p505_p7, %p504_p4 }
  0x1f   : > { %p507_p13 = pnand %p506_p10, %p500_p6 }
  0x21   : > { %510 = shalt.err (!%p507_p13)
}
  0x22   : > { %s626_s18 = smov 32   ;;  %s627_s19 = smov 2  }
  0x23   : > { %413 = dma.hbm_to_vmem [thread:$0]  (!%p719_p0), %s146_s30, 128, %s148_s4, %s136_s6, %s626_s18, %s626_s18, %s627_s19  }
  0x24   : > { %p173_p3 = scmp.lt.s32.totalorder %s623_s14, 3  ;;  %s397_s20 = sshll.u32 %s619_s13, 4 }
  0x25   : > { %s166_s29 = scalar_lea.hbm %s822_s1, %s397_s20  ;;  %s160_s3 = scalar_lea.vmem [#allocation5], %s710_s25 }
  0x26   : > { %p736_p5 = pnand %p398_p1, %p173_p3  ;;  %s168_s7 = sshll.u32 %s160_s3, 4  ;;  %s169_s7 = int_to_ptr.vmem [resolvable:$true] %s168_s7 }
  0x27   : > { %s158_s8 = scalar_lea.sflag [#allocation6], %s710_s25  ;;  %s524_s15 = scalar_lea.vmem %s169_s7, 16 }
  0x28   : > { %p525_p6 = scmp.ne.s32.totalorder %s169_s7, %s524_s15  ;;  %s628_s30 = smov [#allocation5]  }
  0x29   : > { %s529_s4 = sshll.u32 %s628_s30, 4  ;;  %s530_s4 = int_to_ptr.vmem [resolvable:$false] %s529_s4 }
  0x2a   : > { %p527_p4 = pnand %p525_p6, %p485_p2  ;;  %s531_s6 = scalar_lea.vmem %s530_s4, 32 }
  0x2b   : > { %p532_p1 = scmp.lt.s32.totalorder %s169_s7, %s530_s4  ;;  %p533_p10 = scmp.lt.s32.totalorder %s531_s6, %s524_s15 }
  0x2c   : > { %p528_p7 = pneg %p527_p4 }
  0x2d   : > { %p534_p13 = por %p533_p10, %p532_p1 }
  0x2f   : > { %p535_p3 = pnand %p534_p13, %p528_p7 }
  0x31   : > { %538 = shalt.err (!%p535_p3)
}
  0x32   : > { %416 = dma.hbm_to_vmem [thread:$0]  (!%p719_p0), %s166_s29, 16, %s169_s7, %s158_s8  }
  0x33   : > { %177 = sbr.rel (%p736_p5) target bundleno = 139 (0x8b), region = 28  ;;  %s753_s25 = sand.u32 (!%p736_p5), 1, %s607_s10  }
  0x34   : > { %s399_s16 = sshll.u32 (!%p736_p5), %s753_s25, 3  ;;  %s180_s18 = scalar_lea.sflag (!%p736_p5), [#allocation3], %s753_s25 }
  0x35   : > { %s183_s19 = scalar_lea.vmem (!%p736_p5), [#allocation2], %s399_s16 }
  0x38   : > { %590 = dma.done.wait (%p692_p8), %s180_s18, 128  }
  0x39   : > { %592 = vsyncadd (%p692_p8), %s180_s18, 4294967168  ;;  %s189_s5 = scalar_lea.sflag [#allocation6], %s753_s25  ;;  %s191_s20 = scalar_lea.vmem [#allocation5], %s753_s25 }
  0x3a   : > { %594 = dma.done.wait (%p692_p8), %s189_s5, 16  }
  0x3b   : > { %596 = vsyncadd (%p692_p8), %s189_s5, 4294967280  ;;  %vm226_vm0 = vcmask 1041408   ;;  %v216_v0 = vld [vmem:[%s183_s19] sm:$0x3]  ;;  %v217_v1 = vld [vmem:[%s183_s19 + $0x2] sm:$0x3] }
  0x3c   : > { %v218_v2 = vld [vmem:[%s183_s19 + $0x4] sm:$0x3]  ;;  %v219_v3 = vld [vmem:[%s183_s19 + $0x6] sm:$0x3]  ;;  %v227_v4 = vsel %vm226_vm0, %v216_v0, -inf  ;;  %v228_v5 = vsel %vm226_vm0, %v217_v1, -inf }
  0x3d   : > { %v229_v6 = vsel %vm226_vm0, %v218_v2, -inf  ;;  %v230_v7 = vsel %vm226_vm0, %v219_v3, -inf  ;;  %v231_v8 = vmax.f32 %v227_v4, %v228_v5  ;;  %v220_v19 = vld [vmem:[%s191_s20] sm:$0x1]  ;;  %s214_s21 = scalar_lea.vmem [#allocation7], %s753_s25  ;;  %s400_s27 = sshll.u32 %s615_s12, 4 }
  0x3e   : > { %v232_v9 = vmax.f32 %v229_v6, %v230_v7  ;;  %v221_v24 = vunpack.c.0.s8 %v220_v19  ;;  %s292_s26 = sshll.u32 %s214_s21, 4  ;;  %s290_s3 = scalar_lea.hbm %s823_s2, %s400_s27  ;;  %s293_s26 = int_to_ptr.vmem [resolvable:$true] %s292_s26 }
  0x3f   : > { %s279_s7 = scalar_lea.sflag [#allocation4], %s753_s25  ;;  %s539_s8 = scalar_lea.vmem %s293_s26, 16 }
  0x40   : > { %v233_v10 = vmax.f32 %v231_v8, %v232_v9  ;;  %vm222_vm1 = vcmp.eq.s32.totalorder %v221_v24, 0  ;;  %vm223_vm2 = vcmp.eq.s32.totalorder %v221_v24, 1  ;;  %vm224_vm3 = vcmp.eq.s32.totalorder %v221_v24, 2  ;;  %p540_p8 = scmp.ne.s32.totalorder %s293_s26, %s539_s8  ;;  %s629_s15 = smov [#allocation7]  }
  0x41   : > { %v256_v32 = vsel %vm222_vm1, %v216_v0, 0.0  ;;  %v257_v33 = vsel %vm223_vm2, %v217_v1, 0.0  ;;  %v258_v36 = vsel %vm224_vm3, %v218_v2, 0.0  ;;  %vm225_vm4 = vcmp.eq.s32.totalorder %v221_v24, 3  ;;  %s543_s30 = sshll.u32 %s629_s15, 4  ;;  %s544_s30 = int_to_ptr.vmem [resolvable:$false] %s543_s30 }
  0x42   : > { %v234_v11 = vsub.f32 %v216_v0, %v233_v10  ;;  %v235_v12 = vsub.f32 %v217_v1, %v233_v10  ;;  %v236_v13 = vsub.f32 %v218_v2, %v233_v10  ;;  %v237_v14 = vsub.f32 %v219_v3, %v233_v10  ;;  %p541_p0 = pnand %p540_p8, %p696_p9  ;;  %s545_s4 = scalar_lea.vmem %s544_s30, 32 }
  0x43   : > { %v260_v34 = vsel %vm226_vm0, %v256_v32, 0.0  ;;  %v261_v35 = vsel %vm226_vm0, %v257_v33, 0.0  ;;  %v263_v38 = vsel %vm226_vm0, %v258_v36, 0.0  ;;  %v259_v39 = vsel %vm225_vm4, %v219_v3, 0.0  ;;  %p546_p5 = scmp.lt.s32.totalorder %s293_s26, %s544_s30  ;;  %p547_p6 = scmp.lt.s32.totalorder %s545_s4, %s539_s8 }
  0x44   : > { %v238_v15 = vmul.f32 1.442695, %v234_v11  ;;  %v240_v16 = vmul.f32 1.442695, %v235_v12  ;;  %v242_v17 = vmul.f32 1.442695, %v236_v13  ;;  %v262_v37 = vadd.f32 %v261_v35, %v260_v34  ;;  %p542_p2 = pneg %p541_p0 }
  0x45   : > { %v244_v18 = vmul.f32 1.442695, %v237_v14  ;;  %v265_v41 = vsel %vm226_vm0, %v259_v39, 0.0  ;;  %vm267_vm5 = vcmp.ge.s32.totalorder %v221_v24, 0  ;;  %p548_p4 = por %p547_p6, %p546_p5 }
  0x46   : > { %473 = vpow2.f32 %v238_v15  ;;  %v264_v40 = vadd.f32 %v263_v38, %v262_v37 }
  0x47   : > { %475 = vpow2.f32 %v240_v16  ;;  %p549_p7 = pnand %p548_p4, %p542_p2 }
  0x48   : > { %477 = vpow2.f32 %v242_v17  ;;  %v266_v44 = vadd.f32 %v265_v41, %v264_v40 }
  0x49   : > { %479 = vpow2.f32 %v244_v18 }
  0x53   : > { %v474_v20 = vpop.eup %473 }
  0x54   : > { %v476_v21 = vpop.eup %475  ;;  %v246_v22 = vsel %vm226_vm0, %v474_v20, 0.0 }
  0x55   : > { %v478_v23 = vpop.eup %477  ;;  %v247_v25 = vsel %vm226_vm0, %v476_v21, 0.0 }
  0x56   : > { %v480_v26 = vpop.eup %479  ;;  %v248_v27 = vadd.f32 %v247_v25, %v246_v22  ;;  %v249_v28 = vsel %vm226_vm0, %v478_v23, 0.0 }
  0x57   : > { %v251_v29 = vsel %vm226_vm0, %v480_v26, 0.0 }
  0x58   : > { %v250_v30 = vadd.f32 %v249_v28, %v248_v27 }
  0x5a   : > { %v252_v31 = vadd.f32 %v251_v29, %v250_v30 }
  0x5c   : > { %481 = vlog2.f32 %v252_v31 }
  0x69   : > { %v482_v42 = vpop.eup %481 }
  0x6a   : > { %v254_v43 = vmul.f32 0.6931472, %v482_v42 }
  0x6c   : > { %v255_v45 = vadd.f32 %v254_v43, %v233_v10 }
  0x6e   : > { %v268_v46 = vsub.f32 %v255_v45, %v266_v44 }
  0x70   : > { %v269_v47 = vsel %vm267_vm5, %v268_v46, 0.0 }
  0x71   : > { %v270_v48 = vsel %vm226_vm0, %v269_v47, 0.0 }
  0x72   : > { %v271_v49 = vrot.slane %v270_v48, 4 }
  0x74   : > { %v272_v50 = vadd.f32 %v271_v49, %v270_v48 }
  0x76   : > { %v273_v51 = vrot.slane %v272_v50, 2 }
  0x78   : > { %v274_v52 = vadd.f32 %v273_v51, %v272_v50 }
  0x7a   : > { %v275_v53 = vrot.slane %v274_v52, 1 }
  0x7c   : > { %v276_v54 = vadd.f32 %v275_v53, %v274_v52 }
  0x7e   : > { %277 = vst [vmem:[%s214_s21] sm:$0x1] %v276_v54 }
  0x7f   : > { %552 = shalt.err (!%p549_p7)
}
  0x80   : > { %s553_s12 = scalar_lea.hbm %s290_s3, 16  ;;  %s557_s16 = scalar_lea.hbm %s823_s2, 32 }
  0x81   : > { %p554_p1 = scmp.ne.s32.totalorder %s290_s3, %s553_s12  ;;  %p558_p3 = scmp.lt.s32.totalorder %s290_s3, %s823_s2 }
  0x82   : > { %p559_p8 = scmp.lt.s32.totalorder %s557_s16, %s553_s12 }
  0x83   : > { %p555_p10 = pnand %p554_p1, %p696_p9 }
  0x84   : > { %p560_p0 = por %p559_p8, %p558_p3 }
  0x85   : > { %p556_p13 = pneg %p555_p10 }
  0x87   : > { %p561_p12 = pnand %p560_p0, %p556_p13 }
  0x89   : > { %564 = shalt.err (!%p561_p12)
}
  0x8a   : > { %408 = dma.vmem_to_hbm [thread:$0]  (%p696_p9), %s293_s26, 16, %s290_s3, %s279_s7  }
  0x8b PF: > { %s304_s5 = sand.u32 1, %s603_s9   ;;  %p830_p2 = scmp.ge.s32.totalorder %s623_s14, 2 }
  0x8c   : > { %s305_s20 = scalar_lea.sflag [#allocation4], %s304_s5 }
  0x8d   : > { %p418_p5 = pnand %p830_p2, %p703_p11 }
  0x8f   : > { %p419_p6 = pneg %p418_p5 }
  0x91   : > { %598 = dma.done.wait (%p419_p6), %s305_s20, 16  }
  0x92   : > { %600 = vsyncadd (%p419_p6), %s305_s20, 4294967280  ;;  %s21_s14 = sadd.s32 1, %s623_s14   ;;  %s831_s9 = smov %s607_s10 }
  0x93   : > { %p18_p4 = scmp.ge.s32.totalorder %s21_s14, 4   ;;  %s832_s10 = smov %s611_s11 }
  0x94   : > { %s833_s11 = smov %s701_s23  ;;  %s834_s12 = smov %s619_s13 }
  0x95   : > { %s835_s13 = smov %s837_s17  ;;  %20 = sbr.rel (!%p18_p4) target bundleno = 8 (0x8), region = 86 }
  0x9a   :  { %309 = vsyncpa [#allocation3], 1 }
  0x9b   :  { %311 = vsyncpa [#allocation3 + $0x1], 1 }
  0x9c   :  { %312 = vsyncpa [#allocation6], 1 }
  0x9d   :  { %314 = vsyncpa [#allocation6 + $0x1], 1 }
  0x9e   :  { %315 = vsyncpa [#allocation4], 1 }
  0x9f   :  { %317 = vsyncpa [#allocation4 + $0x1], 1 }

</bundles_post_ra>
